<compile_context>
chip_gen: v5e
topology: v5e:2x2
jax: 0.10.0
libtpu: 0.0.40
codegen_flags: <defaults>
</compile_context>

<pallas_src>
import jax
import jax.numpy as jnp
from jax.experimental import pallas as pl
from jax.experimental.pallas import tpu as pltpu


def _shift_lanes(x, d):
    """y[:, i] = x[:, i + d] when 0 <= i + d < L, else 0.   d is a static int.

    Static slice + zero concat along the lane axis; cheap (runs K-1 times per
    batch element on the already-resident VMEM tile).
    """
    if d == 0:
        return x
    c, l = x.shape
    zeros = jnp.zeros((c, abs(d)), x.dtype)
    if d > 0:
        return jnp.concatenate([x[:, d:], zeros], axis=1)
    return jnp.concatenate([zeros, x[:, : l + d]], axis=1)


def tdc_kernel(x_ref, og_ref, wd_ref, wp_ref, wr_ref, b_ref, out_ref, dw_ref):
    """NCW-layout TDC.

    Grid = (N, nL).  Per step:
      x_ref  : (1, Cin,  L)    full-length input row (resident across the L axis)
      og_ref : (1, Corig, TL)  origin-sequence tile
      wd_ref : (Cin, K)        depthwise conv weights
      wp_ref : (Cout, Cin)     pointwise conv weights
      wr_ref : (Cout, Corig)   residual 1x1 weights, pre-scaled by BN scale
      b_ref  : (Cout, 1)       fused bias (wp@bd + bp + bn_scale*br + bn_shift)
      out_ref: (1, Cout, TL)   output tile (lane-dense)
      dw_ref : (Cin, L) f32    scratch: depthwise-conv result for this batch row
    """
    l = pl.program_id(1)
    L = dw_ref.shape[1]
    TL = out_ref.shape[2]
    K = wd_ref.shape[1]
    pad_l = (K - 1) // 2  # matches PyTorch padding='same' (stride 1)

    # Depthwise temporal conv: computed once per batch element over the full
    # length into VMEM scratch; the L-tiles below just slice it.  Halo is
    # handled by static shifts + zero fill (no padded HBM copy).
    @pl.when(l == 0)
    def _():
        x = x_ref[0].astype(jnp.float32)                # (Cin, L)
        wd = wd_ref[...].astype(jnp.float32)            # (Cin, K)
        dw = x * wd[:, pad_l:pad_l + 1]                 # center tap (d == 0)
        for k in range(K):                              # static unroll, tiny K
            d = k - pad_l
            if d == 0:
                continue
            dw = dw + _shift_lanes(x, d) * wd[:, k:k + 1]
        dw_ref[...] = dw                                # bias folded into b_ref

    start = pl.multiple_of(l * TL, TL)
    dw_t = dw_ref[:, pl.ds(start, TL)]                  # (Cin, TL)
    og_t = og_ref[0].astype(jnp.float32)                # (Corig, TL)

    # pointwise conv + (BN-folded) residual conv: two tiny MXU matmuls with
    # L on the lane axis, plus one fused per-channel bias.
    acc = jnp.dot(wp_ref[...].astype(jnp.float32), dw_t,
                  preferred_element_type=jnp.float32)
    acc = acc + jnp.dot(wr_ref[...].astype(jnp.float32), og_t,
                        preferred_element_type=jnp.float32)
    acc = acc + b_ref[...].astype(jnp.float32)

    # ReLU.  TODO(synk): dropout is identity (inference); training-mode RNG
    # mask not implemented.
    out_ref[0] = jnp.maximum(acc, 0.0).astype(out_ref.dtype)


def _pick_tile(L):
    for cand in (1024, 512, 256, 128):
        if L % cand == 0:
            return cand
    return L  # fallback: single full-length tile


def tdc_forward(input_seq, origin_seq, params, kernel_size, eps=1e-5):
    """input_seq: (N, Cin, L), origin_seq: (N, Corig, L) — PyTorch NCW layout.
    Returns (N, Cout, L) in NCW.  Eval-mode BatchNorm; dropout = identity."""
    N, Cin, L = input_seq.shape
    Corig = origin_seq.shape[1]
    K = kernel_size

    # ---- exact parameter folding (wrapper-side, tiny tensors) ----
    wd = params["wd"][:, 0, :].astype(jnp.float32)        # (Cin, K)
    wp = params["wp"][:, :, 0].astype(jnp.float32)        # (Cout, Cin)
    wr = params["wr"][:, :, 0].astype(jnp.float32)        # (Cout, Corig)
    Cout = wp.shape[0]

    bn_scale = params["bn_gamma"] / jnp.sqrt(params["bn_var"] + eps)   # (Cout,)
    wr_eff = wr * bn_scale[:, None]                       # BN scale into weights
    b_eff = (wp @ params["bd"]                            # depthwise bias thru pwc
             + params["bp"]                               # pointwise bias
             + bn_scale * params["br"]                    # residual bias thru BN
             + params["bn_beta"] - params["bn_mean"] * bn_scale)       # BN shift
    b_eff = b_eff.reshape(Cout, 1).astype(jnp.float32)

    TL = _pick_tile(L)
    nL = L // TL
    out_dtype = input_seq.dtype
    in_isz = jnp.dtype(input_seq.dtype).itemsize
    og_isz = jnp.dtype(origin_seq.dtype).itemsize
    out_isz = jnp.dtype(out_dtype).itemsize

    # VMEM budget: double-buffered blocks + full-length depthwise scratch.
    vmem_need = (2 * Cin * L * in_isz
                 + 2 * Corig * TL * og_isz
                 + 2 * Cout * TL * out_isz
                 + Cin * L * 4
                 + 4 * (Cin * K + Cout * Cin + Cout * Corig + Cout))
    vmem_limit = int(min(48 * 2**20, max(16 * 2**20, 4 * vmem_need)))

    flops = 2 * N * L * (K * Cin + (Cin + Corig) * Cout)
    bytes_accessed = (input_seq.size * in_isz + origin_seq.size * og_isz
                      + 4 * (wd.size + wp.size + wr_eff.size + b_eff.size)
                      + N * Cout * L * out_isz)

    full = lambda shape: pl.BlockSpec(shape, lambda n, l: (0,) * len(shape))

    out = pl.pallas_call(
        tdc_kernel,
        out_shape=jax.ShapeDtypeStruct((N, Cout, L), out_dtype),
        grid=(N, nL),
        in_specs=[
            pl.BlockSpec((1, Cin, L), lambda n, l: (n, 0, 0)),      # x: resident over l
            pl.BlockSpec((1, Corig, TL), lambda n, l: (n, 0, l)),   # origin tile
            full((Cin, K)),
            full((Cout, Cin)),
            full((Cout, Corig)),
            full((Cout, 1)),
        ],
        out_specs=pl.BlockSpec((1, Cout, TL), lambda n, l: (n, 0, l)),
        scratch_shapes=[pltpu.VMEM((Cin, L), jnp.float32)],
        compiler_params=pltpu.CompilerParams(
            dimension_semantics=("parallel", "arbitrary"),
            vmem_limit_bytes=vmem_limit),
        cost_estimate=pl.CostEstimate(
            flops=int(flops), transcendentals=0,
            bytes_accessed=int(bytes_accessed)),
    )(input_seq, origin_seq, wd, wp, wr_eff, b_eff)
    return out


def tdc_reference(input_seq, origin_seq, params, kernel_size, eps=1e-5):
    """Pure-JAX reference of the PyTorch forward (eval mode), NCW layout."""
    x = input_seq.astype(jnp.float32)
    og = origin_seq.astype(jnp.float32)
    N, Cin, L = x.shape
    K = kernel_size
    pad_l = (K - 1) // 2
    pad_r = (K - 1) - pad_l
    xp = jnp.pad(x, ((0, 0), (0, 0), (pad_l, pad_r)))

    wd, bd = params["wd"], params["bd"]                   # (Cin,1,K), (Cin,)
    dw = jnp.zeros_like(x)
    for k in range(K):
        dw = dw + xp[:, :, k:k + L] * wd[None, :, 0, k, None]
    dw = dw + bd[None, :, None]

    pw = jnp.einsum("ncl,oc->nol", dw, params["wp"][:, :, 0]) + params["bp"][None, :, None]
    resid = jnp.einsum("ncl,oc->nol", og, params["wr"][:, :, 0]) + params["br"][None, :, None]
    resid = (resid - params["bn_mean"][None, :, None]) / jnp.sqrt(params["bn_var"] + eps)[None, :, None]
    resid = resid * params["bn_gamma"][None, :, None] + params["bn_beta"][None, :, None]
    return jnp.maximum(pw + resid, 0.0)


if __name__ == "__main__":
    # Small shapes consistent with the module; L chosen so the L-tiling path
    # (nL = 2 tiles of 512 lanes) is exercised.
    N, Cin, Corig, Cout, L, K = 2, 8, 4, 16, 1024, 3

    key = jax.random.PRNGKey(0)
    ks = jax.random.split(key, 12)

    params = {
        # torch-layout parameter shapes
        "wd": 0.2 * jax.random.normal(ks[0], (Cin, 1, K), jnp.float32),       # depthwise conv weight
        "bd": 0.1 * jax.random.normal(ks[1], (Cin,), jnp.float32),
        "wp": 0.2 * jax.random.normal(ks[2], (Cout, Cin, 1), jnp.float32),    # pointwise conv weight
        "bp": 0.1 * jax.random.normal(ks[3], (Cout,), jnp.float32),
        "wr": 0.2 * jax.random.normal(ks[4], (Cout, Corig, 1), jnp.float32),  # residual pointwise conv weight
        "br": 0.1 * jax.random.normal(ks[5], (Cout,), jnp.float32),
        # resid_bn (eval mode) parameters / running stats
        "bn_gamma": 1.0 + 0.1 * jax.random.normal(ks[6], (Cout,), jnp.float32),
        "bn_beta": 0.1 * jax.random.normal(ks[7], (Cout,), jnp.float32),
        "bn_mean": 0.1 * jax.random.normal(ks[8], (Cout,), jnp.float32),
        "bn_var": jnp.abs(1.0 + 0.1 * jax.random.normal(ks[9], (Cout,), jnp.float32)),
    }
    # NOTE: self.bn is declared but never used in the PyTorch forward, so it is omitted.

    input_seq = jax.random.normal(ks[10], (N, Cin, L), jnp.float32)     # NCW
    origin_seq = jax.random.normal(ks[11], (N, Corig, L), jnp.float32)  # NCW

    out = tdc_forward(input_seq, origin_seq, params, K)
    out = jax.block_until_ready(out)

    ref = tdc_reference(input_seq, origin_seq, params, K)
    assert out.shape == (N, Cout, L)
    max_err = float(jnp.max(jnp.abs(out - ref)))
    assert jnp.allclose(out, ref, atol=5e-4, rtol=5e-4), max_err

    print("KERNEL_OK")
</pallas_src>

<mosaic_0001>
module attributes {stable_mosaic.version = 11 : i64} {
  func.func @tdc_kernel(%arg0: i32, %arg1: i32, %arg2: memref<1x8x1024xf32, #tpu.memory_space<vmem>>, %arg3: memref<1x4x1024xf32, #tpu.memory_space<vmem>>, %arg4: memref<8x3xf32, #tpu.memory_space<vmem>>, %arg5: memref<16x8xf32, #tpu.memory_space<vmem>>, %arg6: memref<16x4xf32, #tpu.memory_space<vmem>>, %arg7: memref<16x1xf32, #tpu.memory_space<vmem>>, %arg8: memref<1x16x1024xf32, #tpu.memory_space<vmem>>, %arg9: memref<8x1024xf32, #tpu.memory_space<vmem>>) attributes {dimension_semantics = [#tpu.dimension_semantics<parallel>, #tpu.dimension_semantics<arbitrary>], iteration_bounds = array<i64: 2, 1>, scalar_prefetch = 0 : i64, scratch_operands = 1 : i64, tpu.core_type = #tpu.core_type<tc>, window_params = [{transform_indices = @transform_0, window_bounds = array<i64: 1, 8, 1024>}, {transform_indices = @transform_1, window_bounds = array<i64: 1, 4, 1024>}, {pipeline_mode = #tpu.pipeline_mode<synchronous>, transform_indices = @transform_2, window_bounds = array<i64: 8, 3>}, {pipeline_mode = #tpu.pipeline_mode<synchronous>, transform_indices = @transform_3, window_bounds = array<i64: 16, 8>}, {pipeline_mode = #tpu.pipeline_mode<synchronous>, transform_indices = @transform_4, window_bounds = array<i64: 16, 4>}, {pipeline_mode = #tpu.pipeline_mode<synchronous>, transform_indices = @transform_5, window_bounds = array<i64: 16, 1>}, {transform_indices = @transform_6, window_bounds = array<i64: 1, 16, 1024>}]} {
    %c0_i32 = arith.constant 0 : i32
    %0 = arith.cmpi eq, %arg1, %c0_i32 : i32
    %1 = arith.extui %0 : i1 to i32
    %c0_i32_0 = arith.constant 0 : i32
    %2 = arith.cmpi ne, %1, %c0_i32_0 : i32
    scf.if %2 {
      %c0_15 = arith.constant 0 : index
      %c0_16 = arith.constant 0 : index
      %c0_17 = arith.constant 0 : index
      %22 = vector.load %arg2[%c0_15, %c0_16, %c0_17] : memref<1x8x1024xf32, #tpu.memory_space<vmem>>, vector<1x8x1024xf32>
      %23 = vector.shape_cast %22 : vector<1x8x1024xf32> to vector<8x1024xf32>
      %c0_18 = arith.constant 0 : index
      %c0_19 = arith.constant 0 : index
      %24 = vector.load %arg4[%c0_18, %c0_19] : memref<8x3xf32, #tpu.memory_space<vmem>>, vector<8x3xf32>
      %25 = vector.extract_strided_slice %24 {offsets = [0, 1], sizes = [8, 1], strides = [1, 1]} : vector<8x3xf32> to vector<8x1xf32>
      %26 = vector.broadcast %25 : vector<8x1xf32> to vector<8x1024xf32>
      %27 = arith.mulf %23, %26 : vector<8x1024xf32>
      %cst_20 = arith.constant 0.000000e+00 : f32
      %28 = vector.broadcast %cst_20 : f32 to vector<8x1xf32>
      %29 = vector.extract_strided_slice %23 {offsets = [0, 0], sizes = [8, 1023], strides = [1, 1]} : vector<8x1024xf32> to vector<8x1023xf32>
      %30 = tpu.concatenate %28, %29 in 1 : vector<8x1xf32>, vector<8x1023xf32> -> vector<8x1024xf32>
      %31 = vector.extract_strided_slice %24 {offsets = [0, 0], sizes = [8, 1], strides = [1, 1]} : vector<8x3xf32> to vector<8x1xf32>
      %32 = vector.broadcast %31 : vector<8x1xf32> to vector<8x1024xf32>
      %33 = arith.mulf %30, %32 : vector<8x1024xf32>
      %34 = arith.addf %27, %33 : vector<8x1024xf32>
      %cst_21 = arith.constant 0.000000e+00 : f32
      %35 = vector.broadcast %cst_21 : f32 to vector<8x1xf32>
      %36 = vector.extract_strided_slice %23 {offsets = [0, 1], sizes = [8, 1023], strides = [1, 1]} : vector<8x1024xf32> to vector<8x1023xf32>
      %37 = tpu.concatenate %36, %35 in 1 : vector<8x1023xf32>, vector<8x1xf32> -> vector<8x1024xf32>
      %38 = vector.extract_strided_slice %24 {offsets = [0, 2], sizes = [8, 1], strides = [1, 1]} : vector<8x3xf32> to vector<8x1xf32>
      %39 = vector.broadcast %38 : vector<8x1xf32> to vector<8x1024xf32>
      %40 = arith.mulf %37, %39 : vector<8x1024xf32>
      %41 = arith.addf %34, %40 : vector<8x1024xf32>
      %c0_22 = arith.constant 0 : index
      %c0_23 = arith.constant 0 : index
      %42 = vector.load %arg9[%c0_22, %c0_23] : memref<8x1024xf32, #tpu.memory_space<vmem>>, vector<8x1024xf32>
      tpu.vector_store %arg9[%c0_22, %c0_23], %41 {strides = array<i32>} : memref<8x1024xf32, #tpu.memory_space<vmem>>, vector<8x1024xf32>,
    } else {
    }
    %c1024_i32 = arith.constant 1024 : i32
    %3 = arith.muli %arg1, %c1024_i32 : i32
    %4 = tpu.assume_multiple %3, 1024 : i32
    %c0 = arith.constant 0 : index
    %5 = arith.index_cast %4 : i32 to index
    %6 = vector.load %arg9[%c0, %5] : memref<8x1024xf32, #tpu.memory_space<vmem>>, vector<8x1024xf32>
    %c0_1 = arith.constant 0 : index
    %c0_2 = arith.constant 0 : index
    %c0_3 = arith.constant 0 : index
    %7 = vector.load %arg3[%c0_1, %c0_2, %c0_3] : memref<1x4x1024xf32, #tpu.memory_space<vmem>>, vector<1x4x1024xf32>
    %8 = vector.shape_cast %7 : vector<1x4x1024xf32> to vector<4x1024xf32>
    %c0_4 = arith.constant 0 : index
    %c0_5 = arith.constant 0 : index
    %9 = vector.load %arg5[%c0_4, %c0_5] : memref<16x8xf32, #tpu.memory_space<vmem>>, vector<16x8xf32>
    %cst = arith.constant dense<0.000000e+00> : vector<16x1024xf32>
    %10 = tpu.matmul %9, %6, %cst {dimension_numbers = #tpu.dot_dimension_numbers<[1], [0], [0], [1], [0, 0, 1, 1], [], []>} : vector<16x8xf32>, vector<8x1024xf32>, vector<16x1024xf32> -> vector<16x1024xf32>
    %c0_6 = arith.constant 0 : index
    %c0_7 = arith.constant 0 : index
    %11 = vector.load %arg6[%c0_6, %c0_7] : memref<16x4xf32, #tpu.memory_space<vmem>>, vector<16x4xf32>
    %cst_8 = arith.constant dense<0.000000e+00> : vector<16x1024xf32>
    %12 = tpu.matmul %11, %8, %cst_8 {dimension_numbers = #tpu.dot_dimension_numbers<[1], [0], [0], [1], [0, 0, 1, 1], [], []>} : vector<16x4xf32>, vector<4x1024xf32>, vector<16x1024xf32> -> vector<16x1024xf32>
    %13 = arith.addf %10, %12 : vector<16x1024xf32>
    %c0_9 = arith.constant 0 : index
    %c0_10 = arith.constant 0 : index
    %14 = vector.load %arg7[%c0_9, %c0_10] : memref<16x1xf32, #tpu.memory_space<vmem>>, vector<16x1xf32>
    %15 = vector.broadcast %14 : vector<16x1xf32> to vector<16x1024xf32>
    %16 = arith.addf %13, %15 : vector<16x1024xf32>
    %cst_11 = arith.constant 0.000000e+00 : f32
    %17 = vector.broadcast %cst_11 : f32 to vector<16x1024xf32>
    %18 = arith.maximumf %16, %17 : vector<16x1024xf32>
    %c0_12 = arith.constant 0 : index
    %c0_13 = arith.constant 0 : index
    %c0_14 = arith.constant 0 : index
    %19 = vector.load %arg8[%c0_12, %c0_13, %c0_14] : memref<1x16x1024xf32, #tpu.memory_space<vmem>>, vector<1x16x1024xf32>
    %20 = vector.shape_cast %19 : vector<1x16x1024xf32> to vector<16x1024xf32>
    %21 = vector.shape_cast %18 : vector<16x1024xf32> to vector<1x16x1024xf32>
    tpu.vector_store %arg8[%c0_12, %c0_13, %c0_14], %21 {strides = array<i32>} : memref<1x16x1024xf32, #tpu.memory_space<vmem>>, vector<1x16x1024xf32>,
    return
  }
  func.func @transform_0(%arg0: i32, %arg1: i32) -> (i32, i32, i32) {
    %c0_i32 = arith.constant 0 : i32
    %c0_i32_0 = arith.constant 0 : i32
    %c0_i32_1 = arith.constant 0 : i32
    return %arg0, %c0_i32, %c0_i32_0 : i32, i32, i32
  }
  func.func @transform_1(%arg0: i32, %arg1: i32) -> (i32, i32, i32) {
    %c0_i32 = arith.constant 0 : i32
    %c0_i32_0 = arith.constant 0 : i32
    return %arg0, %c0_i32, %arg1 : i32, i32, i32
  }
  func.func @transform_2(%arg0: i32, %arg1: i32) -> (i32, i32) {
    %c0_i32 = arith.constant 0 : i32
    %c0_i32_0 = arith.constant 0 : i32
    %c0_i32_1 = arith.constant 0 : i32
    return %c0_i32, %c0_i32_0 : i32, i32
  }
  func.func @transform_3(%arg0: i32, %arg1: i32) -> (i32, i32) {
    %c0_i32 = arith.constant 0 : i32
    %c0_i32_0 = arith.constant 0 : i32
    %c0_i32_1 = arith.constant 0 : i32
    return %c0_i32, %c0_i32_0 : i32, i32
  }
  func.func @transform_4(%arg0: i32, %arg1: i32) -> (i32, i32) {
    %c0_i32 = arith.constant 0 : i32
    %c0_i32_0 = arith.constant 0 : i32
    %c0_i32_1 = arith.constant 0 : i32
    return %c0_i32, %c0_i32_0 : i32, i32
  }
  func.func @transform_5(%arg0: i32, %arg1: i32) -> (i32, i32) {
    %c0_i32 = arith.constant 0 : i32
    %c0_i32_0 = arith.constant 0 : i32
    %c0_i32_1 = arith.constant 0 : i32
    return %c0_i32, %c0_i32_0 : i32, i32
  }
  func.func @transform_6(%arg0: i32, %arg1: i32) -> (i32, i32, i32) {
    %c0_i32 = arith.constant 0 : i32
    %c0_i32_0 = arith.constant 0 : i32
    return %arg0, %c0_i32, %arg1 : i32, i32, i32
  }
}

</mosaic_0001>

<bundles_post_ra>
// kernel: tpu_custom_call.1
= control target key start
LH: loop header
LB: loop body
LE: loop exit
PB: predicated region body
PF: predicated region fallthrough
CT: control target
= control target key end

     0   :  { %11 = vsyncpa [#allocation4], 0  ;;  %s1719_s0 = inlined_call_operand.hbm [shape: f32[2,8,1024], index: 0, kind: input, shape index: {}]   ;;  %s1720_s1 = inlined_call_operand.vmem [shape: f32[2,4,1024], index: 1, kind: input, shape index: {}]   ;;  %s1721_s2 = inlined_call_operand.vmem [shape: f32[8,3], index: 2, kind: input, shape index: {}]   ;;  %s1722_s3 = inlined_call_operand.vmem [shape: f32[16,8], index: 3, kind: input, shape index: {}]   ;;  %s1723_s4 = inlined_call_operand.vmem [shape: f32[16,4], index: 4, kind: input, shape index: {}]   ;;  %s1724_s5 = inlined_call_operand.vmem [shape: f32[16,1], index: 5, kind: input, shape index: {}]   ;;  %s1725_s6 = inlined_call_operand.hbm [shape: f32[2,16,1024], index: 6, kind: output, shape index: {}]  }
   0x1   :  { %13 = vsyncpa [#allocation4 + $0x1], 0 }
   0x2   :  { %14 = vsyncpa [#allocation5], 0 }
   0x3   :  { %16 = vsyncpa [#allocation5 + $0x1], 0  ;;  %s1381_s21 = smov 0   ;;  %s1383_s22 = smov 0  }
   0x4   :  { %s1385_s23 = smov 0   ;;  %s1387_s24 = smov 0  }
   0x5   :  { %s1389_s25 = smov 0   ;;  %s1391_s26 = smov 0  }
   0x6 LB: > { %s1090_s27 = sadd.s32 4294967295, %s1337_s26   ;;  %s1091_s28 = sadd.s32 4294967294, %s1337_s26   ;;  %s1337_s26 = sphi %s1391_s26, %s22_s26   ;;  %s1333_s25 = sphi %s1389_s25, %s1734_s25   ;;  %s1329_s24 = sphi %s1387_s24, %s1733_s24   ;;  %s1325_s23 = sphi %s1385_s23, %s1732_s23   ;;  %s1321_s22 = sphi %s1383_s22, %s1731_s22   ;;  %s1317_s21 = sphi %s1381_s21, %s1730_s21  }
   0x7   : > { %s34_s29 = sadd.s32 1, %s1333_s25  ;;  %s41_s30 = sadd.s32 1, %s1325_s23 }
   0x8   : > { %p36_p0 = scmp.ge.s32.totalorder %s34_s29, 2  ;;  %p48_p1 = scmp.ne.s32.totalorder %s1325_s23, %s1321_s22 }
   0x9   : > { %p49_p2 = scmp.eq.s32.totalorder %s1337_s26, 0  ;;  %p54_p3 = scmp.ne.s32.totalorder %s1321_s22, %s1317_s21 }
   0xa   : > { %s1736_s29 = smov (%p36_p0, %s34_s29), 0  ;;  %p55_p5 = scmp.eq.s32.totalorder %s1090_s27, 0 }
   0xb   : > { %p1422_p4 = por %p49_p2, %p48_p1  ;;  %s38_s8 = ssub.s32 %s1333_s25, %s1736_s29 }
   0xc   : > { %p192_p6 = scmp.eq.s32.totalorder %s1090_s27, 1  ;;  %p39_p7 = scmp.eq.s32.totalorder %s38_s8, 0 }
   0xd   : > { %p1428_p8 = por %p55_p5, %p54_p3  ;;  %p198_p10 = scmp.eq.s32.totalorder %s1091_s28, 1 }
   0xe   : > { %p1432_p9 = por %p192_p6, %p48_p1  ;;  %p1093_p12 = scmp.ge.s32.totalorder %s1337_s26, 2 }
   0xf   : > { %s1437_s11 = scalar_select %p39_p7, %s1325_s23, %s41_s30  }
  0x10   : > { %p1439_p11 = por %p198_p10, %p54_p3  ;;  %p1162_p13 = scmp.lt.s32.totalorder %s1337_s26, 2 }
  0x11   : > { %s230_s13 = sand.u32 1, %s1325_s23   ;;  %s1147_s15 = sshll.u32 %s1333_s25, 6 }
  0x12   : > { %s1094_s14 = sshll.u32 %s230_s13, 6  ;;  %s239_s18 = scalar_lea.hbm %s1719_s0, %s1147_s15 }
  0x13   : > { %s234_s19 = scalar_lea.vmem [#allocation3], %s1094_s14  ;;  %s241_s27 = sshll.u32 %s239_s18, 4  ;;  %s242_s27 = int_to_ptr.hbm [resolvable:$true] %s241_s27 }
  0x14   : > { %s243_s20 = sshll.u32 %s234_s19, 4  ;;  %p1155_p0 = pnand %p1162_p13, %p1422_p4  ;;  %s244_s20 = int_to_ptr.vmem [resolvable:$true] %s243_s20 }
  0x15   : > { %p1097_p1 = scmp.ge.s32.totalorder %s1337_s26, 1  ;;  %p261_p2 = scmp.lt.s32.totalorder %s1337_s26, 3 }
  0x16   : > { %s231_s28 = scalar_lea.sflag [#allocation4], %s230_s13 }
  0x17   : > { %1157 = dma.hbm_to_vmem [thread:$0]  (!%p1155_p0), %s242_s27, 1024, %s244_s20, %s231_s28  }
  0x18   : > { %p262_p3 = pnand %p1097_p1, %p261_p2 }
  0x19   : > { %s1455_s30 = sand.u32 (!%p262_p3), 1, %s1321_s22  }
  0x1a   : > { %265 = sbr.rel (%p262_p3) target bundleno = 350 (0x15e), region = 44  ;;  %s1098_s8 = sshll.u32 (!%p262_p3), %s1455_s30, 6 }
  0x1b   : > { %s268_s14 = scalar_lea.sflag (!%p262_p3), [#allocation4], %s1455_s30  ;;  %s1459_s15 = scalar_lea.vmem (!%p262_p3), [#allocation3], %s1098_s8 }
  0x1f   : > { %1308 = dma.done.wait (%p1428_p8), %s268_s14, 1024  }
  0x20   : > { %1310 = vsyncadd (%p1428_p8), %s268_s14, 4294966272  ;;  %v1339_v0 = vmov 0   ;;  %v1340_v1 = vmov 1   ;;  %v333_v2 = vld [vmem:[%s1721_s2] sm:$0xff]  ;;  %v1472_v4 = vld [vmem:[%s1459_s15 + $0x8] sm:$0xff]  ;;  %s1341_s9 = smov 1  }
  0x21   : > { %1220 = vset.pattern.permute.xlu2 %v1339_v0  ;;  %1219 = vset.pattern.permute.xlu1 %v1340_v1  ;;  %v1469_v3 = vld [vmem:[%s1459_s15 + $0x18] sm:$0xff]  ;;  %v1477_v5 = vld [vmem:[%s1459_s15 + $0x10] sm:$0xff]  ;;  %s1342_s16 = smov 127   ;;  %v1343_v6 = vmov 2   ;;  %v1482_v7 = vld [vmem:[%s1459_s15 + $0x20] sm:$0xff]  ;;  %p311_p4 = scmp.lt.s32.totalorder %s1329_s24, 1 }
  0x22   : > { %1224 = vset.pattern.permute.xlu0 %v1339_v0  ;;  %389 = vperm.xlu2 %1220, %v333_v2   ;;  %v1487_v8 = vld [vmem:[%s1459_s15] sm:$0xff]  ;;  %v1493_v9 = vld [vmem:[%s1459_s15 + $0x38] sm:$0xff]  ;;  %v1496_v10 = vld [vmem:[%s1459_s15 + $0x30] sm:$0xff]  ;;  %vm516_vm0 = vcmask 1043456   ;;  %vm509_vm1 = vcmask 31744   ;;  %vm371_vm2 = vcmask 7168  }
  0x23   : > { %361 = vrot.lane.b32.xlu1 %v1469_v3, %s1341_s9  ;;  %357 = vrot.lane.b32.xlu0 %v1472_v4, %s1341_s9  ;;  %v1499_v11 = vld [vmem:[%s1459_s15 + $0x28] sm:$0xff]  ;;  %s312_s17 = scalar_select %p311_p4, %s1329_s24, 1  ;;  %v488_v13 = vld [vmem:[%s1723_s4] sm:$0xff]  ;;  %vm424_vm3 = vcmask 1039360   ;;  %vm717_vm4 = vcmask 64512  }
  0x24   : > { %v489_v17 = vld [vmem:[%s1723_s4 + $0x8] sm:$0xff]  ;;  %v908_v32 = vld [vmem:[%s1724_s5] sm:$0xff]  ;;  %s1149_s8 = sshll.u32 %s1329_s24, 7  ;;  %s1275_s20 = scalar_lea.hbm %s1725_s6, 256 }
  0x25   : > { %s1148_s18 = sshll.u32 %s312_s17, 5  ;;  %v1579_v51 = vld [vmem:[%s1722_s3] sm:$0xff]  ;;  %s982_s7 = scalar_lea.hbm %s1725_s6, %s1149_s8 }
  0x26   : > { %s1513_s27 = scalar_lea.vmem %s1720_s1, %s1148_s18  ;;  %s985_s13 = sshll.u32 %s982_s7, 4  ;;  %s986_s13 = int_to_ptr.hbm [resolvable:$true] %s985_s13 }
  0x27   : > { %v483_v12 = vld [vmem:[%s1513_s27 + $0x8] sm:$0xff]  ;;  %v482_v16 = vld [vmem:[%s1513_s27] sm:$0xff]  ;;  %v485_v18 = vld [vmem:[%s1513_s27 + $0x18] sm:$0xff] }
  0x28   : > { %496 = vst [vmem:[#allocation1 + $0x10] ss:$2 sm:$0xff] %v483_v12  ;;  %v484_v23 = vld [vmem:[%s1513_s27 + $0x10] sm:$0xff]  ;;  %s1099_s27 = sshll.u32 %s1455_s30, 7 }
  0x29   : > { %494 = vst [vmem:[#allocation1] ss:$2 sm:$0xff] %v482_v16  ;;  %s1658_s28 = scalar_lea.vmem [#allocation6], %s1099_s27 }
  0x2a   : > { %412 = vrot.lane.b32.xlu2 %v1477_v5, %s1342_s16  ;;  %500 = vst [vmem:[#allocation1 + $0x30] ss:$2 sm:$0xff] %v485_v18  ;;  %s983_s24 = sshll.u32 %s1658_s28, 4  ;;  %s984_s24 = int_to_ptr.vmem [resolvable:$true] %s983_s24 }
  0x2b   : > { %336 = vperm.xlu1 %1219, %v333_v2   ;;  %359 = vrot.lane.b32.xlu0 %v1477_v5, %s1341_s9  ;;  %498 = vst [vmem:[#allocation1 + $0x20] ss:$2 sm:$0xff] %v484_v23 }
  0x2c   : > { %1221 = vset.pattern.permute.xlu2 %v1343_v6 }
  0x2f   : > { %v503_v14 = vld.sshfl [vmem:[#allocation1 + $0x10] sm:$0xff pattern:$0x75316420]  ;;  %v504_v15 = vld.sshfl [vmem:[#allocation1 + $0x18] sm:$0xff pattern:$0x75316420] }
  0x30   : > { %1108 = vmatpush.msk.msra.mxu2 %vm516_vm0, %v503_v14  ;;  %1111 = vmatpush.msk.msra.mxu3 %vm516_vm0, %v504_v15  ;;  %v501_v19 = vld.sshfl [vmem:[#allocation1] sm:$0xff pattern:$0x75316420]  ;;  %v502_v20 = vld.sshfl [vmem:[#allocation1 + $0x8] sm:$0xff pattern:$0x75316420] }
  0x31   : > { %1109 = vmatmul.msk.f32.vlgmr.msra.gmra.mxu2 %vm509_vm1, %v488_v13  ;;  %1112 = vmatmul.msk.f32.vlgmr.msra.gmra.mxu3 %vm509_vm1, %v488_v13  ;;  %v507_v21 = vld.sshfl [vmem:[#allocation1 + $0x30] sm:$0xff pattern:$0x75316420]  ;;  %v508_v22 = vld.sshfl [vmem:[#allocation1 + $0x38] sm:$0xff pattern:$0x75316420] }
  0x32   : > { %442 = vperm.xlu2 %1221, %v333_v2   ;;  %1102 = vmatpush.msk.msra.mxu0 %vm516_vm0, %v501_v19  ;;  %v505_v24 = vld.sshfl [vmem:[#allocation1 + $0x20] sm:$0xff pattern:$0x75316420]  ;;  %v506_v25 = vld.sshfl [vmem:[#allocation1 + $0x28] sm:$0xff pattern:$0x75316420] }
  0x33   : > { %416 = vrot.lane.b32.xlu1 %v1482_v7, %s1342_s16  ;;  %414 = vrot.lane.b32.xlu0 %v1469_v3, %s1342_s16  ;;  %v487_v2 = vld [vmem:[%s1722_s3 + $0x8] sm:$0xff] }
  0x34   : > { %1222 = vset.pattern.permute.xlu1 %v1339_v0  ;;  %1105 = vmatpush.msk.msra.mxu1 %vm516_vm0, %v502_v20 }
  0x35   : > { %1103 = vmatmul.msk.f32.vlgmr.msra.gmra.mxu0 %vm509_vm1, %v488_v13  ;;  %1106 = vmatmul.msk.f32.vlgmr.msra.gmra.mxu1 %vm509_vm1, %v488_v13 }
  0x36   : > { %1120 = vmatpush.msk.msrb.mxu2 %vm516_vm0, %v507_v21  ;;  %1123 = vmatpush.msk.msrb.mxu3 %vm516_vm0, %v508_v22 }
  0x37   : > { %1114 = vmatpush.msk.msrb.mxu0 %vm516_vm0, %v505_v24  ;;  %1117 = vmatpush.msk.msrb.mxu1 %vm516_vm0, %v506_v25 }
  0x39   : > { %1110 = vmatmul.msk.f32.gmra.mxu2 %vm509_vm1, %v489_v17  ;;  %1113 = vmatmul.msk.f32.gmra.mxu3 %vm509_vm1, %v489_v17 }
  0x3a   : > { %410 = vrot.lane.b32.xlu2 %v1472_v4, %s1342_s16 }
  0x3b   : > { %408 = vrot.lane.b32.xlu1 %v1487_v8, %s1342_s16  ;;  %355 = vrot.lane.b32.xlu0 %v1487_v8, %s1341_s9 }
  0x3c   : > { %1223 = vset.pattern.permute.xlu2 %v1339_v0 }
  0x3d   : > { %1104 = vmatmul.msk.f32.gmra.mxu0 %vm509_vm1, %v489_v17  ;;  %1107 = vmatmul.msk.f32.gmra.mxu1 %vm509_vm1, %v489_v17 }
  0x41   : > { %1121 = vmatmul.msk.f32.vlgmr.msrb.gmra.mxu2 %vm509_vm1, %v488_v13  ;;  %1124 = vmatmul.msk.f32.vlgmr.msrb.gmra.mxu3 %vm509_vm1, %v488_v13 }
  0x42   : > { %369 = vrot.lane.b32.xlu2 %v1493_v9, %s1341_s9 }
  0x43   : > { %367 = vrot.lane.b32.xlu1 %v1496_v10, %s1341_s9  ;;  %365 = vrot.lane.b32.xlu0 %v1499_v11, %s1341_s9 }
  0x45   : > { %1115 = vmatmul.msk.f32.vlgmr.msrb.gmra.mxu0 %vm509_vm1, %v488_v13  ;;  %1118 = vmatmul.msk.f32.vlgmr.msrb.gmra.mxu1 %vm509_vm1, %v488_v13 }
  0x49   : > { %1122 = vmatmul.msk.f32.gmra.mxu2 %vm509_vm1, %v489_v17  ;;  %1125 = vmatmul.msk.f32.gmra.mxu3 %vm509_vm1, %v489_v17 }
  0x4a   : > { %363 = vrot.lane.b32.xlu2 %v1482_v7, %s1341_s9  ;;  %s969_s9 = scalar_lea.sflag [#allocation5], %s1455_s30 }
  0x4b   : > { %422 = vrot.lane.b32.xlu1 %v1493_v9, %s1342_s16  ;;  %420 = vrot.lane.b32.xlu0 %v1496_v10, %s1342_s16 }
  0x4d   : > { %1116 = vmatmul.msk.f32.gmra.mxu0 %vm509_vm1, %v489_v17  ;;  %1119 = vmatmul.msk.f32.gmra.mxu1 %vm509_vm1, %v489_v17 }
  0x53   : > { %418 = vrot.lane.b32.xlu0 %v1499_v11, %s1342_s16  ;;  %912 = vperm.xlu1 %1222, %v908_v32   ;;  %s1269_s16 = sshra.s32 %s986_s13, 4  ;;  %s1270_s16 = int_to_ptr.hbm [resolvable:$true] %s1269_s16 }
  0x54   : > { %s1271_s17 = scalar_lea.hbm %s1270_s16, 128  ;;  %p1276_p8 = scmp.lt.s32.totalorder %s1270_s16, %s1725_s6 }
  0x55   : > { %p1272_p5 = scmp.ne.s32.totalorder %s1270_s16, %s1271_s17  ;;  %p1277_p10 = scmp.lt.s32.totalorder %s1275_s20, %s1271_s17 }
  0x57   : > { %p1273_p6 = pnand %p1272_p5, %p1432_p9  ;;  %p1278_p13 = por %p1277_p10, %p1276_p8 }
  0x59   : > { %p1274_p7 = pneg %p1273_p6 }
  0x5b   : > { %p1279_p0 = pnand %p1278_p13, %p1274_p7 }
  0x7c   : > { %v1547_v26 = vpop.permute.xlu2 %389 }
  0x84   : > { %v413_v28 = vpop.permute.xlu2 %412 }
  0x8c   : > { %v1558_v33 = vpop.permute.xlu2 %442 }
  0x94   : > { %v411_v48 = vpop.permute.xlu2 %410 }
  0x95   : > { %v1551_v27 = vpop.permute.xlu1 %361  ;;  %v358_v29 = vpop.permute.xlu0 %357  ;;  %v426_v54 = vsel %vm424_vm3, %v411_v48, %v413_v28 }
  0x96   : > { %v446_v62 = vmul.f32 %v1558_v33, %v426_v54 }
  0x9d   : > { %v1553_v30 = vpop.permute.xlu1 %336  ;;  %v360_v31 = vpop.permute.xlu0 %359 }
  0x9e   : > { %v373_v34 = vsel %vm371_vm2, %v358_v29, %v360_v31  ;;  %v374_v35 = vsel %vm371_vm2, %v360_v31, %v1551_v27  ;;  %v341_v36 = vmul.f32 %v1553_v30, %v1477_v5  ;;  %v342_v37 = vmul.f32 %v1553_v30, %v1469_v3  ;;  %v370_v3 = vpop.permute.xlu2 %369 }
  0x9f   : > { %v394_v38 = vmul.f32 %v1547_v26, %v373_v34  ;;  %v395_v39 = vmul.f32 %v1547_v26, %v374_v35  ;;  %v340_v58 = vmul.f32 %v1553_v30, %v1472_v4  ;;  %v339_v59 = vmul.f32 %v1553_v30, %v1487_v8  ;;  %v909_v8 = vld [vmem:[%s1724_s5 + $0x8] sm:$0xff] }
  0xa0   : > { %917 = vperm.xlu2 %1223, %v909_v8   ;;  %v346_v17 = vmul.f32 %v1553_v30, %v1493_v9  ;;  %v345_v20 = vmul.f32 %v1553_v30, %v1496_v10 }
  0xa1   : > { %v402_v44 = vadd.f32 %v394_v38, %v341_v36  ;;  %v403_v45 = vadd.f32 %v395_v39, %v342_v37  ;;  %v343_v36 = vmul.f32 %v1553_v30, %v1482_v7 }
  0xa5   : > { %v1569_v40 = vpop.permute.xlu1 %416  ;;  %v415_v41 = vpop.permute.xlu0 %414 }
  0xa6   : > { %v427_v42 = vsel %vm424_vm3, %v413_v28, %v415_v41  ;;  %v428_v43 = vsel %vm424_vm3, %v415_v41, %v1569_v40  ;;  %v364_v19 = vpop.permute.xlu2 %363 }
  0xa7   : > { %v447_v46 = vmul.f32 %v1558_v33, %v427_v42  ;;  %v448_v47 = vmul.f32 %v1558_v33, %v428_v43 }
  0xa9   : > { %v455_v49 = vadd.f32 %v447_v46, %v402_v44  ;;  %v456_v50 = vadd.f32 %v448_v47, %v403_v45 }
  0xab   : > { %785 = vmatpush.msra.mxu2 %v455_v49  ;;  %808 = vmatpush.msra.mxu3 %v456_v50 }
  0xac   : > { %1130 = vmatmul.msk.f32.vlgmr.msra.gmra.mxu2 %vm717_vm4, %v1579_v51  ;;  %1132 = vmatmul.msk.f32.vlgmr.msra.gmra.mxu3 %vm717_vm4, %v1579_v51 }
  0xad   : > { %v409_v52 = vpop.permute.xlu1 %408  ;;  %v356_v53 = vpop.permute.xlu0 %355 }
  0xae   : > { %v425_v55 = vsel %vm424_vm3, %v409_v52, %v411_v48  ;;  %v372_v56 = vsel %vm371_vm2, %v356_v53, %v358_v29  ;;  %v387_v57 = vsel %vm371_vm2, 0.0, %v356_v53  ;;  %v375_v29 = vsel %vm371_vm2, %v1551_v27, %v364_v19 }
  0xaf   : > { %v392_v60 = vmul.f32 %v1547_v26, %v387_v57  ;;  %v393_v61 = vmul.f32 %v1547_v26, %v372_v56  ;;  %v445_v63 = vmul.f32 %v1558_v33, %v425_v55  ;;  %v396_v34 = vmul.f32 %v1547_v26, %v375_v29 }
  0xb0   : > { %v344_v27 = vmul.f32 %v1553_v30, %v1499_v11 }
  0xb1   : > { %v400_v0 = vadd.f32 %v392_v60, %v339_v59  ;;  %v401_v1 = vadd.f32 %v393_v61, %v340_v58 }
  0xb2   : > { %v550_v30 = vpop.f32.mrf.mxu0 }
  0xb3   : > { %v453_v5 = vadd.f32 %v445_v63, %v400_v0  ;;  %v454_v4 = vadd.f32 %v446_v62, %v401_v1 }
  0xb4   : > { %1131 = vmatmul.msk.f32.gmra.mxu2 %vm717_vm4, %v487_v2  ;;  %1133 = vmatmul.msk.f32.gmra.mxu3 %vm717_vm4, %v487_v2  ;;  %v596_v7 = vpop.f32.mrf.mxu2  ;;  %v619_v11 = vpop.f32.mrf.mxu3 }
  0xb5   : > { %v368_v6 = vpop.permute.xlu1 %367  ;;  %762 = vmatpush.msra.mxu1 %v454_v4  ;;  %v366_v12 = vpop.permute.xlu0 %365  ;;  %739 = vmatpush.msra.mxu0 %v453_v5 }
  0xb6   : > { %1126 = vmatmul.msk.f32.vlgmr.msra.gmra.mxu0 %vm717_vm4, %v1579_v51  ;;  %1128 = vmatmul.msk.f32.vlgmr.msra.gmra.mxu1 %vm717_vm4, %v1579_v51  ;;  %v378_v13 = vsel %vm371_vm2, %v368_v6, %v370_v3  ;;  %v377_v14 = vsel %vm371_vm2, %v366_v12, %v368_v6  ;;  %v376_v10 = vsel %vm371_vm2, %v364_v19, %v366_v12 }
  0xb7   : > { %v399_v15 = vmul.f32 %v1547_v26, %v378_v13  ;;  %v398_v16 = vmul.f32 %v1547_v26, %v377_v14  ;;  %v397_v35 = vmul.f32 %v1547_v26, %v376_v10  ;;  %v404_v26 = vadd.f32 %v396_v34, %v343_v36 }
  0xb9   : > { %v407_v23 = vadd.f32 %v399_v15, %v346_v17  ;;  %v406_v28 = vadd.f32 %v398_v16, %v345_v20  ;;  %v405_v41 = vadd.f32 %v397_v35, %v344_v27 }
  0xba   : > { %v553_v47 = vpop.f32.mrf.mxu0 }
  0xbc   : > { %v622_v46 = vpop.f32.mrf.mxu3 }
  0xbd   : > { %v423_v18 = vpop.permute.xlu1 %422  ;;  %v421_v22 = vpop.permute.xlu0 %420 }
  0xbe   : > { %v440_v21 = vsel %vm424_vm3, %v423_v18, 0.0  ;;  %v431_v25 = vsel %vm424_vm3, %v421_v22, %v423_v18  ;;  %1127 = vmatmul.msk.f32.gmra.mxu0 %vm717_vm4, %v487_v2  ;;  %1129 = vmatmul.msk.f32.gmra.mxu1 %vm717_vm4, %v487_v2 }
  0xbf   : > { %v452_v24 = vmul.f32 %v1558_v33, %v440_v21  ;;  %v451_v9 = vmul.f32 %v1558_v33, %v431_v25 }
  0xc1   : > { %v460_v31 = vadd.f32 %v452_v24, %v407_v23  ;;  %v459_v32 = vadd.f32 %v451_v9, %v406_v28 }
  0xc3   : > { %900 = vmatpush.msrb.mxu3 %v460_v31  ;;  %877 = vmatpush.msrb.mxu2 %v459_v32 }
  0xc4   : > { %1140 = vmatmul.msk.f32.vlgmr.msrb.gmra.mxu3 %vm717_vm4, %v1579_v51  ;;  %1138 = vmatmul.msk.f32.vlgmr.msrb.gmra.mxu2 %vm717_vm4, %v1579_v51  ;;  %v711_v50 = vpop.f32.mrf.mxu3 }
  0xc5   : > { %v419_v37 = vpop.permute.xlu0 %418  ;;  %v913_v57 = vpop.permute.xlu1 %912 }
  0xc6   : > { %v429_v38 = vsel %vm424_vm3, %v1569_v40, %v419_v37  ;;  %v430_v39 = vsel %vm424_vm3, %v419_v37, %v421_v22  ;;  %v599_v40 = vpop.f32.mrf.mxu2 }
  0xc7   : > { %v449_v42 = vmul.f32 %v1558_v33, %v429_v38  ;;  %v450_v43 = vmul.f32 %v1558_v33, %v430_v39  ;;  %v573_v33 = vpop.f32.mrf.mxu1 }
  0xc9   : > { %v457_v44 = vadd.f32 %v449_v42, %v404_v26  ;;  %v458_v45 = vadd.f32 %v450_v43, %v405_v41 }
  0xcb   : > { %831 = vmatpush.msrb.mxu0 %v457_v44  ;;  %854 = vmatpush.msrb.mxu1 %v458_v45 }
  0xcc   : > { %1134 = vmatmul.msk.f32.vlgmr.msrb.gmra.mxu0 %vm717_vm4, %v1579_v51  ;;  %1136 = vmatmul.msk.f32.vlgmr.msrb.gmra.mxu1 %vm717_vm4, %v1579_v51  ;;  %v642_v51 = vpop.f32.mrf.mxu0  ;;  %v1651_v54 = vpop.f32.mrf.mxu3 }
  0xcd   : > { %1139 = vmatmul.msk.f32.gmra.mxu2 %vm717_vm4, %v487_v2  ;;  %1141 = vmatmul.msk.f32.gmra.mxu3 %vm717_vm4, %v487_v2 }
  0xce   : > { %v688_v49 = vpop.f32.mrf.mxu2 }
  0xcf   : > { %v576_v48 = vpop.f32.mrf.mxu1 }
  0xd4   : > { %1135 = vmatmul.msk.f32.gmra.mxu0 %vm717_vm4, %v487_v2  ;;  %1137 = vmatmul.msk.f32.gmra.mxu1 %vm717_vm4, %v487_v2  ;;  %v1653_v55 = vpop.f32.mrf.mxu0 }
  0xd6   : > { %v1649_v53 = vpop.f32.mrf.mxu2 }
  0xd7   : > { %v665_v52 = vpop.f32.mrf.mxu1 }
  0xdf   : > { %v1655_v56 = vpop.f32.mrf.mxu1 }
  0xfa   : > { %v918_v12 = vpop.permute.xlu2 %917 }
 0x12f   : > { %v787_v58 = vpop.f32.mrf.mxu2  ;;  %v810_v59 = vpop.f32.mrf.mxu3 }
 0x130   : > { %v788_v60 = vadd.f32 %v787_v58, %v596_v7  ;;  %v811_v61 = vadd.f32 %v810_v59, %v619_v11 }
 0x132   : > { %v922_v62 = vadd.f32 %v913_v57, %v788_v60  ;;  %v923_v63 = vadd.f32 %v913_v57, %v811_v61 }
 0x133   : > { %v741_v0 = vpop.f32.mrf.mxu0  ;;  %v764_v1 = vpop.f32.mrf.mxu1 }
 0x134   : > { %v938_v2 = vmax.f32 %v922_v62, 0.0  ;;  %v939_v3 = vmax.f32 %v923_v63, 0.0  ;;  %v742_v5 = vadd.f32 %v741_v0, %v550_v30  ;;  %v765_v4 = vadd.f32 %v764_v1, %v573_v33 }
 0x136   : > { %954 = vst [vmem:[%s1658_s28 + $0x10] sm:$0xff] %v938_v2  ;;  %v920_v6 = vadd.f32 %v913_v57, %v742_v5  ;;  %v921_v8 = vadd.f32 %v913_v57, %v765_v4 }
 0x137   : > { %955 = vst [vmem:[%s1658_s28 + $0x18] sm:$0xff] %v939_v3  ;;  %v790_v13 = vpop.f32.mrf.mxu2  ;;  %v813_v14 = vpop.f32.mrf.mxu3 }
 0x138   : > { %v936_v15 = vmax.f32 %v920_v6, 0.0  ;;  %v937_v16 = vmax.f32 %v921_v8, 0.0  ;;  %v791_v17 = vadd.f32 %v790_v13, %v599_v40  ;;  %v814_v18 = vadd.f32 %v813_v14, %v622_v46 }
 0x13a   : > { %952 = vst [vmem:[%s1658_s28] sm:$0xff] %v936_v15  ;;  %v930_v19 = vadd.f32 %v918_v12, %v791_v17  ;;  %v931_v20 = vadd.f32 %v918_v12, %v814_v18 }
 0x13b   : > { %953 = vst [vmem:[%s1658_s28 + $0x8] sm:$0xff] %v937_v16  ;;  %v744_v21 = vpop.f32.mrf.mxu0  ;;  %v767_v22 = vpop.f32.mrf.mxu1 }
 0x13c   : > { %v946_v23 = vmax.f32 %v930_v19, 0.0  ;;  %v947_v24 = vmax.f32 %v931_v20, 0.0  ;;  %v745_v25 = vadd.f32 %v744_v21, %v553_v47  ;;  %v768_v28 = vadd.f32 %v767_v22, %v576_v48 }
 0x13e   : > { %962 = vst [vmem:[%s1658_s28 + $0x50] sm:$0xff] %v946_v23  ;;  %v928_v9 = vadd.f32 %v918_v12, %v745_v25  ;;  %v929_v29 = vadd.f32 %v918_v12, %v768_v28 }
 0x13f   : > { %963 = vst [vmem:[%s1658_s28 + $0x58] sm:$0xff] %v947_v24 }
 0x140   : > { %v944_v10 = vmax.f32 %v928_v9, 0.0  ;;  %v945_v31 = vmax.f32 %v929_v29, 0.0 }
 0x142   : > { %960 = vst [vmem:[%s1658_s28 + $0x40] sm:$0xff] %v944_v10 }
 0x143   : > { %961 = vst [vmem:[%s1658_s28 + $0x48] sm:$0xff] %v945_v31 }
 0x147   : > { %v902_v32 = vpop.f32.mrf.mxu3  ;;  %v879_v34 = vpop.f32.mrf.mxu2 }
 0x148   : > { %v903_v35 = vadd.f32 %v902_v32, %v711_v50  ;;  %v880_v36 = vadd.f32 %v879_v34, %v688_v49 }
 0x149   : > { %v833_v37 = vpop.f32.mrf.mxu0  ;;  %v856_v38 = vpop.f32.mrf.mxu1 }
 0x14a   : > { %v927_v27 = vadd.f32 %v913_v57, %v903_v35  ;;  %v926_v39 = vadd.f32 %v913_v57, %v880_v36  ;;  %v834_v26 = vadd.f32 %v833_v37, %v642_v51  ;;  %v857_v41 = vadd.f32 %v856_v38, %v665_v52 }
 0x14c   : > { %v943_v42 = vmax.f32 %v927_v27, 0.0  ;;  %v942_v43 = vmax.f32 %v926_v39, 0.0  ;;  %v924_v44 = vadd.f32 %v913_v57, %v834_v26  ;;  %v925_v45 = vadd.f32 %v913_v57, %v857_v41 }
 0x14e   : > { %959 = vst [vmem:[%s1658_s28 + $0x38] sm:$0xff] %v943_v42  ;;  %v940_v7 = vmax.f32 %v924_v44, 0.0  ;;  %v941_v11 = vmax.f32 %v925_v45, 0.0 }
 0x14f   : > { %958 = vst [vmem:[%s1658_s28 + $0x30] sm:$0xff] %v942_v43 }
 0x150   : > { %956 = vst [vmem:[%s1658_s28 + $0x20] sm:$0xff] %v940_v7  ;;  %v882_v30 = vpop.f32.mrf.mxu2  ;;  %v905_v33 = vpop.f32.mrf.mxu3 }
 0x151   : > { %957 = vst [vmem:[%s1658_s28 + $0x28] sm:$0xff] %v941_v11  ;;  %v883_v40 = vadd.f32 %v882_v30, %v1649_v53  ;;  %v906_v46 = vadd.f32 %v905_v33, %v1651_v54  ;;  %v836_v47 = vpop.f32.mrf.mxu0  ;;  %v859_v48 = vpop.f32.mrf.mxu1 }
 0x152   : > { %v837_v49 = vadd.f32 %v836_v47, %v1653_v55  ;;  %v860_v50 = vadd.f32 %v859_v48, %v1655_v56 }
 0x153   : > { %v934_v51 = vadd.f32 %v918_v12, %v883_v40  ;;  %v935_v52 = vadd.f32 %v918_v12, %v906_v46 }
 0x154   : > { %v932_v53 = vadd.f32 %v918_v12, %v837_v49  ;;  %v933_v57 = vadd.f32 %v918_v12, %v860_v50 }
 0x155   : > { %v950_v54 = vmax.f32 %v934_v51, 0.0  ;;  %v951_v58 = vmax.f32 %v935_v52, 0.0 }
 0x156   : > { %v948_v59 = vmax.f32 %v932_v53, 0.0  ;;  %v949_v60 = vmax.f32 %v933_v57, 0.0 }
 0x157   : > { %966 = vst [vmem:[%s1658_s28 + $0x70] sm:$0xff] %v950_v54 }
 0x158   : > { %967 = vst [vmem:[%s1658_s28 + $0x78] sm:$0xff] %v951_v58 }
 0x159   : > { %964 = vst [vmem:[%s1658_s28 + $0x60] sm:$0xff] %v948_v59 }
 0x15a   : > { %965 = vst [vmem:[%s1658_s28 + $0x68] sm:$0xff] %v949_v60 }
 0x15b   : > { %1282 = shalt.err (!%p1279_p0)
}
 0x15c   : > { %s1344_s30 = smov 1024   ;;  %s1345_s28 = smov 64  }
 0x15d   : > { %1152 = dma.vmem_to_hbm [thread:$0]  (%p1432_p9), %s984_s24, 2048, %s986_s13, %s969_s9, %s1344_s30, %s1344_s30, %s1345_s28  }
 0x15e PF: > { %s1000_s14 = sand.u32 1, %s1317_s21   ;;  %p1159_p1 = pnand %p1093_p12, %p1439_p11 }
 0x15f   : > { %s1001_s15 = scalar_lea.sflag [#allocation5], %s1000_s14 }
 0x160   : > { %p1160_p2 = pneg %p1159_p1 }
 0x162   : > { %1312 = dma.done.wait (%p1160_p2), %s1001_s15, 2048  }
 0x163   : > { %1314 = vsyncadd (%p1160_p2), %s1001_s15, 4294965248  ;;  %s22_s26 = sadd.s32 1, %s1337_s26   ;;  %s1730_s21 = smov %s1321_s22 }
 0x164   : > { %p19_p3 = scmp.ge.s32.totalorder %s22_s26, 4   ;;  %s1731_s22 = smov %s1325_s23 }
 0x165   : > { %s1732_s23 = smov %s1437_s11  ;;  %s1733_s24 = smov %s1333_s25 }
 0x166   : > { %s1734_s25 = smov %s1736_s29  ;;  %21 = sbr.rel (!%p19_p3) target bundleno = 6 (0x6), region = 100 }
 0x16b   :  { %1007 = vsyncpa [#allocation4], 1 }
 0x16c   :  { %1009 = vsyncpa [#allocation4 + $0x1], 1 }
 0x16d   :  { %1010 = vsyncpa [#allocation5], 1 }
 0x16e   :  { %1012 = vsyncpa [#allocation5 + $0x1], 1 }

</bundles_post_ra>
